<compile_context>
chip_gen: v7x
topology: tpu7x:2x2x1
jax: 0.10.0
libtpu: 0.0.40
codegen_flags: <defaults>
</compile_context>

<pallas_src>
import functools

import jax
import jax.numpy as jnp
from jax.experimental import pallas as pl
from jax.experimental.pallas import tpu as pltpu

_SUBLANE = 8            # f32 sublane count
_SMALL_BATCH_MAX = 1024  # grid-less whole-array path up to this many rows


def _round_up(n: int, m: int) -> int:
    return ((n + m - 1) // m) * m


def _linear_kernel(x_ref, w_ref, b_ref, o_ref):
    # MXU matmul with f32 accumulate; broadcast bias add on the VPU.
    acc = jnp.dot(x_ref[...], w_ref[...], preferred_element_type=jnp.float32)
    o_ref[...] = (acc + b_ref[...]).astype(o_ref.dtype)


@functools.partial(jax.jit, static_argnames=("batch_tile",))
def dummy_model_forward(x, w, b, *, batch_tile: int = 2048):
    """x: (B, S), w: (S, A), b: (1, A) -> (B, A).  All float32."""
    B, S = x.shape
    S2, A = w.shape
    assert S == S2 and b.shape == (1, A)
    dtype = x.dtype

    out_shape = jax.ShapeDtypeStruct((B, A), dtype)

    if B <= _SMALL_BATCH_MAX:
        # Grid-less: whole arrays live in VMEM for one call.  No padding, no slicing.
        return pl.pallas_call(
            _linear_kernel,
            out_shape=out_shape,
            in_specs=[
                pl.BlockSpec(memory_space=pltpu.MemorySpace.VMEM),
                pl.BlockSpec(memory_space=pltpu.MemorySpace.VMEM),
                pl.BlockSpec(memory_space=pltpu.MemorySpace.VMEM),
            ],
            out_specs=pl.BlockSpec(memory_space=pltpu.MemorySpace.VMEM),
        )(x, w, b)

    # Batch-tiled path.  Pick tb so we get at least 2 grid steps (v7x megacore),
    # capped at batch_tile, and a multiple of the f32 sublane count.
    assert batch_tile % _SUBLANE == 0
    tb = min(batch_tile, _round_up(pl.cdiv(B, 2), _SUBLANE))
    grid_steps = pl.cdiv(B, tb)   # ragged last block handled by Pallas masking

    return pl.pallas_call(
        _linear_kernel,
        out_shape=out_shape,
        grid=(grid_steps,),
        in_specs=[
            pl.BlockSpec((tb, S), lambda i: (i, 0)),   # x: streamed per batch tile
            pl.BlockSpec((S, A), lambda i: (0, 0)),    # W: fetched once, VMEM-resident
            pl.BlockSpec((1, A), lambda i: (0, 0)),    # b: fetched once, VMEM-resident
        ],
        out_specs=pl.BlockSpec((tb, A), lambda i: (i, 0)),
        compiler_params=pltpu.CompilerParams(
            # Independent batch tiles -> shard across TensorCores on v7x megacore.
            dimension_semantics=("parallel",),
        ),
    )(x, w, b)


if __name__ == "__main__":
    # Small shapes consistent with a DQN: batch=2, state_size=32, action_size=8.
    batch, state_size, action_size = 2, 32, 8

    key = jax.random.PRNGKey(0)
    kx, kw, kb, kx2 = jax.random.split(key, 4)

    x = jax.random.normal(kx, (batch, state_size), dtype=jnp.float32)
    # Deterministic parameter init (mimics nn.Linear's uniform(-1/sqrt(fan_in), ...)).
    bound = 1.0 / jnp.sqrt(jnp.float32(state_size))
    w = jax.random.uniform(kw, (state_size, action_size), dtype=jnp.float32,
                           minval=-bound, maxval=bound)
    b = jax.random.uniform(kb, (1, action_size), dtype=jnp.float32,
                           minval=-bound, maxval=bound)

    # Small-batch path (grid-less, whole-array VMEM, zero padding / slicing).
    out = jax.block_until_ready(dummy_model_forward(x, w, b))
    ref = x @ w + b
    assert out.shape == (batch, action_size)
    assert jnp.allclose(out, ref, atol=1e-5, rtol=1e-5)

    # Batch-tiled ("replay buffer") path: weights resident, parallel batch axis,
    # ragged final tile, no input/output padding.
    big_batch = 5000  # > _SMALL_BATCH_MAX and not a multiple of the tile on purpose
    x_big = jax.random.normal(kx2, (big_batch, state_size), dtype=jnp.float32)
    out_big = jax.block_until_ready(dummy_model_forward(x_big, w, b))
    ref_big = x_big @ w + b
    assert out_big.shape == (big_batch, action_size)
    assert jnp.allclose(out_big, ref_big, atol=1e-5, rtol=1e-5)

    print("KERNEL_OK")
</pallas_src>

<mosaic_0001>
module attributes {stable_mosaic.version = 11 : i64} {
  func.func @_linear_kernel(%arg0: memref<2x32xf32, #tpu.memory_space<vmem>>, %arg1: memref<32x8xf32, #tpu.memory_space<vmem>>, %arg2: memref<1x8xf32, #tpu.memory_space<vmem>>, %arg3: memref<2x8xf32, #tpu.memory_space<vmem>>) attributes {dimension_semantics = [], scalar_prefetch = 0 : i64, scratch_operands = 0 : i64, tpu.core_type = #tpu.core_type<tc>} {
    %c0 = arith.constant 0 : index
    %c0_0 = arith.constant 0 : index
    %0 = vector.load %arg0[%c0, %c0_0] : memref<2x32xf32, #tpu.memory_space<vmem>>, vector<2x32xf32>
    %c0_1 = arith.constant 0 : index
    %c0_2 = arith.constant 0 : index
    %1 = vector.load %arg1[%c0_1, %c0_2] : memref<32x8xf32, #tpu.memory_space<vmem>>, vector<32x8xf32>
    %cst = arith.constant dense<0.000000e+00> : vector<2x8xf32>
    %2 = tpu.matmul %0, %1, %cst {dimension_numbers = #tpu.dot_dimension_numbers<[1], [0], [0], [1], [0, 0, 1, 1], [], []>} : vector<2x32xf32>, vector<32x8xf32>, vector<2x8xf32> -> vector<2x8xf32>
    %c0_3 = arith.constant 0 : index
    %c0_4 = arith.constant 0 : index
    %3 = vector.load %arg2[%c0_3, %c0_4] : memref<1x8xf32, #tpu.memory_space<vmem>>, vector<1x8xf32>
    %4 = vector.broadcast %3 : vector<1x8xf32> to vector<2x8xf32>
    %5 = arith.addf %2, %4 : vector<2x8xf32>
    %c0_5 = arith.constant 0 : index
    %c0_6 = arith.constant 0 : index
    %6 = vector.load %arg3[%c0_5, %c0_6] : memref<2x8xf32, #tpu.memory_space<vmem>>, vector<2x8xf32>
    tpu.vector_store %arg3[%c0_5, %c0_6], %5 {strides = array<i32>} : memref<2x8xf32, #tpu.memory_space<vmem>>, vector<2x8xf32>,
    return
  }
}

</mosaic_0001>

<bundles_post_ra>
// kernel: dummy_model_forward.1
= control target key start
LH: loop header
LB: loop body
LE: loop exit
PB: predicated region body
PF: predicated region fallthrough
CT: control target
= control target key end

     0   :  { %v169_v3 = vmov 0.0|0.0   ;;  %vm170_vm0 = vmmov 0   ;;  %v171_v6 = vmov 0.0   ;;  %s223_s0 = inlined_call_operand.vmem [shape: f32[2,32], index: 0, kind: input, shape index: {}]   ;;  %s224_s1 = inlined_call_operand.vmem [shape: f32[32,8], index: 1, kind: input, shape index: {}]   ;;  %s225_s2 = inlined_call_operand.vmem [shape: f32[1,8], index: 2, kind: input, shape index: {}]   ;;  %s226_s3 = inlined_call_operand.hbm [shape: f32[2,8], index: 3, kind: output, shape index: {}]  }
   0x1   :  { %v16_v0 = vld [vmem:[%s224_s1] sm:$0xff]  ;;  %v17_v1 = vld [vmem:[%s224_s1 + $0x8] sm:$0xff]  ;;  %v18_v2 = vld [vmem:[%s224_s1 + $0x10] sm:$0xff]  ;;  %135 = vmatprep.subr.bf16.mxu0 %v169_v3  ;;  %132 = vmatprep.mubr.msk.f32.mxu0 %vm170_vm0, %v171_v6 }
   0x2   :  { %v136_v4 = vpack.c.bf16 %v17_v1, %v16_v0  ;;  %v19_v5 = vld [vmem:[%s224_s1 + $0x18] sm:$0xff] }
   0x3   :  { %8 = vsyncpa [#allocation3], 0  ;;  %v139_v7 = vpack.c.bf16 %v19_v5, %v18_v2  ;;  %v15_v8 = vld [vmem:[%s223_s0] sm:$0x3]  ;;  %vm27_vm1 = vcmask 261120   ;;  %s172_s24 = smov [#allocation2]  }
   0x4   :  { %137 = vmatpush3.bf16.msra.mxu0 %v136_v4  ;;  %v117_v9 = vld [vmem:[%s225_s2] ss:$0 sm:$0xff]  ;;  %s109_s1 = sshll.u32 %s172_s24, 4  ;;  %vm101_vm2 = vcmask 58368   ;;  %s110_s1 = int_to_ptr.vmem [resolvable:$true] %s109_s1 }
   0x5   :  { %138 = vmatprep.subr.bf16.mxu0 %v169_v3  ;;  %s145_s25 = scalar_lea.vmem %s110_s1, 32  ;;  %p150_p1 = scmp.lt.s32.totalorder %s110_s1, %s110_s1 }
   0x6   :  { %p146_p0 = scmp.ne.s32.totalorder %s110_s1, %s145_s25  ;;  %p151_p2 = scmp.lt.s32.totalorder %s145_s25, %s145_s25 }
   0x8   :  { %140 = vmatpush3.bf16.msra.mxu0 %v139_v7  ;;  %p152_p3 = por %p151_p2, %p150_p1 }
   0xa   :  { %p153_p4 = pnand %p152_p3, %p146_p0 }
   0xb   :  { %133 = vmatmul.mubr.msk.f32.vlgmr.msra.gmra.mrb[0].mxu0 %vm27_vm1, %v15_v8 }
  0xde   :  { %v97_v10 = vpop.f32.mrb[0].mxu0 }
  0xdf   :  { %v98_v11 = vadd.f32 %v117_v9, %v97_v10  ;;  %v134_v12 = vpop.f32.mrb[1].mxu0 }
  0xe1   :  { %102 = vst.msk [vmem:[#allocation2] sm:$0x3] %vm101_vm2, %v98_v11 }
  0xe2   :  { %156 = shalt.err (!%p153_p4)
}
  0xe3   :  { %s157_s27 = scalar_lea.hbm %s226_s3, 32 }
  0xe4   :  { %p158_p5 = scmp.ne.s32.totalorder %s226_s3, %s157_s27  ;;  %p161_p6 = scmp.lt.u32.totalorder %s157_s27, %s226_s3 }
  0xe6   :  { %p163_p7 = pnand %p161_p6, %p158_p5 }
  0xe8   :  { %166 = shalt.err (!%p163_p7)
}
  0xe9   :  { %112 = dma.vmem_to_hbm [thread:$0]  %s110_s1, 32, %s226_s3, [#allocation3]  }
  0xea   :  { %167 = dma.done.wait [#allocation3], 32  }
  0xeb   :  { %168 = vsyncadd [#allocation3], 4294967264 }
  0xec   :  { %116 = vsyncpa [#allocation3], 1 }

</bundles_post_ra>
